<compile_context>
chip_gen: v7x
topology: tpu7x:2x2x1
jax: 0.10.0
libtpu: 0.0.40
codegen_flags: <defaults>
</compile_context>

<pallas_src>
import functools

import jax
import jax.numpy as jnp
from jax import lax
from jax.experimental import pallas as pl
from jax.experimental.pallas import tpu as pltpu


def _bilstm_kernel(xt_ref, wih_f_ref, whh_f_ref, b_f_ref, wih_b_ref, b_b_ref,
                   fcw_ref, out_ref, *, seq_len, batch_pad, hidden, mm_dtype):
    S, B, H = seq_len, batch_pad, hidden

    def sig(v):
        # Exact identity sigmoid(v) = 0.5*(1 + tanh(v/2)): single EUP op, no divide,
        # no exp(-v) overflow.
        return 0.5 + 0.5 * jnp.tanh(0.5 * v)

    def cell(gates, c_prev=None):
        # PyTorch gate order: i, f, g, o.  Two full-width (B, 4H) EUP passes, then
        # cheap static lane slices for the gate groups.
        sg = sig(gates)                      # (B, 4H)
        th = jnp.tanh(gates)                 # (B, 4H)
        i = sg[:, 0 * H:1 * H]
        f = sg[:, 1 * H:2 * H]
        g = th[:, 2 * H:3 * H]
        o = sg[:, 3 * H:4 * H]
        c = i * g if c_prev is None else f * c_prev + i * g
        h = o * jnp.tanh(c)
        return h, c

    xt = xt_ref[...]                                       # (S*B, E) f32, time-major
    # All forward-direction input projections in ONE MXU matmul (hoisted out of the loop).
    xg = jnp.dot(xt.astype(mm_dtype), wih_f_ref[...].astype(mm_dtype),
                 preferred_element_type=jnp.float32) + b_f_ref[...]     # (S*B, 4H) f32
    # B is a multiple of 8, 4H a multiple of 128 -> tile-aligned leading-axis indexing.
    xg = xg.reshape(S, B, 4 * H)
    whh = whh_f_ref[...].astype(mm_dtype)                  # (H, 4H), cast once, reused S-1x

    # t = 0 with zero initial state, peeled: no recurrent matmul needed.
    h, c = cell(xg[0])
    for t in range(1, S):                                  # inherently sequential recurrence
        gates = xg[t] + jnp.dot(h.astype(mm_dtype), whh,
                                preferred_element_type=jnp.float32)
        h, c = cell(gates, c)
    h_fwd = h                                              # forward hidden at t = S-1

    # Reverse-direction contribution to output[:, -1, :] = reverse LSTM's first step on
    # the last token with zero initial state (W_hh_reverse therefore never contributes).
    x_last = xt[(S - 1) * B:S * B, :].astype(mm_dtype)     # (B, E), 8-aligned static slice
    gates_b = jnp.dot(x_last, wih_b_ref[...].astype(mm_dtype),
                      preferred_element_type=jnp.float32) + b_b_ref[...]
    h_bwd, _ = cell(gates_b)

    # fc1 (bias=False): weight split so h_fwd / h_bwd never get concatenated across lanes;
    # fcw columns are padded to 128 lanes so the store below is an unmasked full-lane vst.
    fcw = fcw_ref[...].astype(mm_dtype)                    # (2H, NC_pad)
    logits = (jnp.dot(h_fwd.astype(mm_dtype), fcw[0:H, :],
                      preferred_element_type=jnp.float32) +
              jnp.dot(h_bwd.astype(mm_dtype), fcw[H:2 * H, :],
                      preferred_element_type=jnp.float32))
    out_ref[...] = jnp.where(logits >= 0.0, logits, 0.01 * logits)      # F.leaky_relu


def _round_up(n, m):
    return ((n + m - 1) // m) * m


@functools.partial(jax.jit, static_argnames=("matmul_dtype",))
def lstm_forward(x, wih_f, whh_f, b_f, wih_b, b_b, fc_w, *, matmul_dtype=jnp.float32):
    """x: (B, S, E). wih_*: (E, 4H). whh_f: (H, 4H). b_*: (1, 4H). fc_w: (2H, NC)."""
    x = x.astype(jnp.float32)                              # matches lstm_input.float()
    B, S, E = x.shape
    H = whh_f.shape[0]
    NC = fc_w.shape[1]

    B_pad = _round_up(max(B, 8), 8)                        # f32 sublane alignment
    NC_pad = _round_up(NC, 128)                            # lane-dense output store

    if B_pad != B:
        x = jnp.pad(x, ((0, B_pad - B), (0, 0), (0, 0)))
    fcw_p = jnp.pad(fc_w, ((0, 0), (0, NC_pad - NC))) if NC_pad != NC else fc_w

    # Time-major, flattened: row t*B_pad + b holds token t of batch element b, so the
    # kernel can do one fused input-projection matmul and take tile-aligned per-step rows.
    xt = jnp.transpose(x, (1, 0, 2)).reshape(S * B_pad, E)

    kernel = functools.partial(_bilstm_kernel, seq_len=S, batch_pad=B_pad,
                               hidden=H, mm_dtype=matmul_dtype)
    vmem = pltpu.MemorySpace.VMEM
    out = pl.pallas_call(
        kernel,
        out_shape=jax.ShapeDtypeStruct((B_pad, NC_pad), jnp.float32),
        in_specs=[pl.BlockSpec(memory_space=vmem)] * 7,    # whole arrays resident in VMEM
        out_specs=pl.BlockSpec(memory_space=vmem),
    )(xt, wih_f, whh_f, b_f, wih_b, b_b, fcw_p)
    return out[:B, :NC]


def init_params(key, emb_size, hidden_size, num_classes):
    """Create PyTorch-layout LSTM/Linear params, pre-transposed for the kernel."""
    H, E = hidden_size, emb_size
    ks = jax.random.split(key, 9)
    rnd = lambda k, shape: 0.1 * jax.random.normal(k, shape, jnp.float32)
    w_ih_f = rnd(ks[0], (4 * H, E)); w_hh_f = rnd(ks[1], (4 * H, H))
    b_ih_f = rnd(ks[2], (4 * H,));   b_hh_f = rnd(ks[3], (4 * H,))
    w_ih_b = rnd(ks[4], (4 * H, E)); w_hh_b = rnd(ks[5], (4 * H, H))
    b_ih_b = rnd(ks[6], (4 * H,));   b_hh_b = rnd(ks[7], (4 * H,))
    fc_w = rnd(ks[8], (num_classes, 2 * H))                # nn.Linear(2H, NC, bias=False)
    return {
        "wih_f": w_ih_f.T,                                 # (E, 4H)
        "whh_f": w_hh_f.T,                                 # (H, 4H)
        "b_f": (b_ih_f + b_hh_f).reshape(1, 4 * H),
        "wih_b": w_ih_b.T,                                 # (E, 4H)
        "whh_b": w_hh_b.T,                                 # reference only (rev. 1st step -> h_prev=0)
        "b_b": (b_ih_b + b_hh_b).reshape(1, 4 * H),
        "fc_w": fc_w.T,                                    # (2H, NC)
    }


def _lstm_scan_ref(x_tm, w_ih, w_hh, b, hidden):
    """Full LSTM over time-major (S, B, E); returns all hidden states (S, B, H)."""
    H = hidden
    hp = jax.lax.Precision.HIGHEST

    def step(carry, x_t):
        h, c = carry
        gates = (jnp.dot(x_t, w_ih, precision=hp) +
                 jnp.dot(h, w_hh, precision=hp) + b)
        i = jax.nn.sigmoid(gates[:, :H])
        f = jax.nn.sigmoid(gates[:, H:2 * H])
        g = jnp.tanh(gates[:, 2 * H:3 * H])
        o = jax.nn.sigmoid(gates[:, 3 * H:])
        c = f * c + i * g
        h = o * jnp.tanh(c)
        return (h, c), h

    B = x_tm.shape[1]
    zeros = jnp.zeros((B, H), jnp.float32)
    _, hs = lax.scan(step, (zeros, zeros), x_tm)
    return hs


def reference_forward(x, p):
    """Pure-JAX reference matching the PyTorch forward (full bidirectional LSTM)."""
    H = p["whh_f"].shape[0]
    x_tm = jnp.transpose(x.astype(jnp.float32), (1, 0, 2))            # (S, B, E)
    hs_f = _lstm_scan_ref(x_tm, p["wih_f"], p["whh_f"], p["b_f"], H)            # (S, B, H)
    hs_b = _lstm_scan_ref(x_tm[::-1], p["wih_b"], p["whh_b"], p["b_b"], H)[::-1]
    out_last = jnp.concatenate([hs_f[-1], hs_b[-1]], axis=1)          # output[:, -1, :]
    logits = jnp.dot(out_last, p["fc_w"], precision=jax.lax.Precision.HIGHEST)
    return jnp.where(logits >= 0.0, logits, 0.01 * logits)            # leaky_relu (0.01)


if __name__ == "__main__":
    # configs: jieba_embedding_size=32, LSTM_hidden_size=32, num_classes=4; batch=2, seq=8
    B, S, E, H, NC = 2, 8, 32, 32, 4
    key = jax.random.PRNGKey(0)
    kx, kp = jax.random.split(key)
    x = jax.random.normal(kx, (B, S, E), jnp.float32)
    p = init_params(kp, emb_size=E, hidden_size=H, num_classes=NC)
    ref = reference_forward(x, p)

    # f32 MXU operands: bit-tight parity with the HIGHEST-precision f32 reference.
    out = lstm_forward(x, p["wih_f"], p["whh_f"], p["b_f"],
                       p["wih_b"], p["b_b"], p["fc_w"])
    out = jax.block_until_ready(out)
    assert out.shape == (B, NC), out.shape
    assert jnp.allclose(out, ref, atol=2e-4, rtol=2e-4), (out, ref)

    # bf16 MXU operands (native-rate MXU on v6e/v7x); elementwise cell math stays f32.
    out_bf16 = lstm_forward(x, p["wih_f"], p["whh_f"], p["b_f"],
                            p["wih_b"], p["b_b"], p["fc_w"],
                            matmul_dtype=jnp.bfloat16)
    out_bf16 = jax.block_until_ready(out_bf16)
    assert out_bf16.shape == (B, NC), out_bf16.shape
    assert jnp.allclose(out_bf16, ref, atol=5e-2, rtol=5e-2), (out_bf16, ref)

    print("KERNEL_OK")
</pallas_src>

<mosaic_0001>
module attributes {stable_mosaic.version = 11 : i64} {
  func.func @_bilstm_kernel(%arg0: memref<64x32xf32, #tpu.memory_space<vmem>>, %arg1: memref<32x128xf32, #tpu.memory_space<vmem>>, %arg2: memref<32x128xf32, #tpu.memory_space<vmem>>, %arg3: memref<1x128xf32, #tpu.memory_space<vmem>>, %arg4: memref<32x128xf32, #tpu.memory_space<vmem>>, %arg5: memref<1x128xf32, #tpu.memory_space<vmem>>, %arg6: memref<64x128xf32, #tpu.memory_space<vmem>>, %arg7: memref<8x128xf32, #tpu.memory_space<vmem>>) attributes {dimension_semantics = [], scalar_prefetch = 0 : i64, scratch_operands = 0 : i64, tpu.core_type = #tpu.core_type<tc>} {
    %c0 = arith.constant 0 : index
    %c0_0 = arith.constant 0 : index
    %0 = vector.load %arg0[%c0, %c0_0] : memref<64x32xf32, #tpu.memory_space<vmem>>, vector<64x32xf32>
    %c0_1 = arith.constant 0 : index
    %c0_2 = arith.constant 0 : index
    %1 = vector.load %arg1[%c0_1, %c0_2] : memref<32x128xf32, #tpu.memory_space<vmem>>, vector<32x128xf32>
    %cst = arith.constant dense<0.000000e+00> : vector<64x128xf32>
    %2 = tpu.matmul %0, %1, %cst {dimension_numbers = #tpu.dot_dimension_numbers<[1], [0], [0], [1], [0, 0, 1, 1], [], []>} : vector<64x32xf32>, vector<32x128xf32>, vector<64x128xf32> -> vector<64x128xf32>
    %c0_3 = arith.constant 0 : index
    %c0_4 = arith.constant 0 : index
    %3 = vector.load %arg3[%c0_3, %c0_4] : memref<1x128xf32, #tpu.memory_space<vmem>>, vector<1x128xf32>
    %4 = vector.broadcast %3 : vector<1x128xf32> to vector<64x128xf32>
    %5 = arith.addf %2, %4 : vector<64x128xf32>
    %6 = vector.shape_cast %5 : vector<64x128xf32> to vector<8x8x128xf32>
    %c0_5 = arith.constant 0 : index
    %c0_6 = arith.constant 0 : index
    %7 = vector.load %arg2[%c0_5, %c0_6] : memref<32x128xf32, #tpu.memory_space<vmem>>, vector<32x128xf32>
    %8 = vector.extract_strided_slice %6 {offsets = [0, 0, 0], sizes = [1, 8, 128], strides = [1, 1, 1]} : vector<8x8x128xf32> to vector<1x8x128xf32>
    %9 = vector.shape_cast %8 : vector<1x8x128xf32> to vector<8x128xf32>
    %cst_7 = arith.constant 5.000000e-01 : f32
    %10 = vector.broadcast %cst_7 : f32 to vector<8x128xf32>
    %11 = arith.mulf %10, %9 : vector<8x128xf32>
    %12 = math.tanh %11 : vector<8x128xf32>
    %cst_8 = arith.constant 5.000000e-01 : f32
    %13 = vector.broadcast %cst_8 : f32 to vector<8x128xf32>
    %14 = arith.mulf %13, %12 : vector<8x128xf32>
    %cst_9 = arith.constant 5.000000e-01 : f32
    %15 = vector.broadcast %cst_9 : f32 to vector<8x128xf32>
    %16 = arith.addf %15, %14 : vector<8x128xf32>
    %17 = math.tanh %9 : vector<8x128xf32>
    %18 = vector.extract_strided_slice %16 {offsets = [0, 0], sizes = [8, 32], strides = [1, 1]} : vector<8x128xf32> to vector<8x32xf32>
    %19 = vector.extract_strided_slice %17 {offsets = [0, 64], sizes = [8, 32], strides = [1, 1]} : vector<8x128xf32> to vector<8x32xf32>
    %20 = vector.extract_strided_slice %16 {offsets = [0, 96], sizes = [8, 32], strides = [1, 1]} : vector<8x128xf32> to vector<8x32xf32>
    %21 = arith.mulf %18, %19 : vector<8x32xf32>
    %22 = math.tanh %21 : vector<8x32xf32>
    %23 = arith.mulf %20, %22 : vector<8x32xf32>
    %24 = vector.extract_strided_slice %6 {offsets = [1, 0, 0], sizes = [1, 8, 128], strides = [1, 1, 1]} : vector<8x8x128xf32> to vector<1x8x128xf32>
    %25 = vector.shape_cast %24 : vector<1x8x128xf32> to vector<8x128xf32>
    %cst_10 = arith.constant dense<0.000000e+00> : vector<8x128xf32>
    %26 = tpu.matmul %23, %7, %cst_10 {dimension_numbers = #tpu.dot_dimension_numbers<[1], [0], [0], [1], [0, 0, 1, 1], [], []>} : vector<8x32xf32>, vector<32x128xf32>, vector<8x128xf32> -> vector<8x128xf32>
    %27 = arith.addf %25, %26 : vector<8x128xf32>
    %cst_11 = arith.constant 5.000000e-01 : f32
    %28 = vector.broadcast %cst_11 : f32 to vector<8x128xf32>
    %29 = arith.mulf %28, %27 : vector<8x128xf32>
    %30 = math.tanh %29 : vector<8x128xf32>
    %cst_12 = arith.constant 5.000000e-01 : f32
    %31 = vector.broadcast %cst_12 : f32 to vector<8x128xf32>
    %32 = arith.mulf %31, %30 : vector<8x128xf32>
    %cst_13 = arith.constant 5.000000e-01 : f32
    %33 = vector.broadcast %cst_13 : f32 to vector<8x128xf32>
    %34 = arith.addf %33, %32 : vector<8x128xf32>
    %35 = math.tanh %27 : vector<8x128xf32>
    %36 = vector.extract_strided_slice %34 {offsets = [0, 0], sizes = [8, 32], strides = [1, 1]} : vector<8x128xf32> to vector<8x32xf32>
    %37 = vector.extract_strided_slice %34 {offsets = [0, 32], sizes = [8, 32], strides = [1, 1]} : vector<8x128xf32> to vector<8x32xf32>
    %38 = vector.extract_strided_slice %35 {offsets = [0, 64], sizes = [8, 32], strides = [1, 1]} : vector<8x128xf32> to vector<8x32xf32>
    %39 = vector.extract_strided_slice %34 {offsets = [0, 96], sizes = [8, 32], strides = [1, 1]} : vector<8x128xf32> to vector<8x32xf32>
    %40 = arith.mulf %37, %21 : vector<8x32xf32>
    %41 = arith.mulf %36, %38 : vector<8x32xf32>
    %42 = arith.addf %40, %41 : vector<8x32xf32>
    %43 = math.tanh %42 : vector<8x32xf32>
    %44 = arith.mulf %39, %43 : vector<8x32xf32>
    %45 = vector.extract_strided_slice %6 {offsets = [2, 0, 0], sizes = [1, 8, 128], strides = [1, 1, 1]} : vector<8x8x128xf32> to vector<1x8x128xf32>
    %46 = vector.shape_cast %45 : vector<1x8x128xf32> to vector<8x128xf32>
    %cst_14 = arith.constant dense<0.000000e+00> : vector<8x128xf32>
    %47 = tpu.matmul %44, %7, %cst_14 {dimension_numbers = #tpu.dot_dimension_numbers<[1], [0], [0], [1], [0, 0, 1, 1], [], []>} : vector<8x32xf32>, vector<32x128xf32>, vector<8x128xf32> -> vector<8x128xf32>
    %48 = arith.addf %46, %47 : vector<8x128xf32>
    %cst_15 = arith.constant 5.000000e-01 : f32
    %49 = vector.broadcast %cst_15 : f32 to vector<8x128xf32>
    %50 = arith.mulf %49, %48 : vector<8x128xf32>
    %51 = math.tanh %50 : vector<8x128xf32>
    %cst_16 = arith.constant 5.000000e-01 : f32
    %52 = vector.broadcast %cst_16 : f32 to vector<8x128xf32>
    %53 = arith.mulf %52, %51 : vector<8x128xf32>
    %cst_17 = arith.constant 5.000000e-01 : f32
    %54 = vector.broadcast %cst_17 : f32 to vector<8x128xf32>
    %55 = arith.addf %54, %53 : vector<8x128xf32>
    %56 = math.tanh %48 : vector<8x128xf32>
    %57 = vector.extract_strided_slice %55 {offsets = [0, 0], sizes = [8, 32], strides = [1, 1]} : vector<8x128xf32> to vector<8x32xf32>
    %58 = vector.extract_strided_slice %55 {offsets = [0, 32], sizes = [8, 32], strides = [1, 1]} : vector<8x128xf32> to vector<8x32xf32>
    %59 = vector.extract_strided_slice %56 {offsets = [0, 64], sizes = [8, 32], strides = [1, 1]} : vector<8x128xf32> to vector<8x32xf32>
    %60 = vector.extract_strided_slice %55 {offsets = [0, 96], sizes = [8, 32], strides = [1, 1]} : vector<8x128xf32> to vector<8x32xf32>
    %61 = arith.mulf %58, %42 : vector<8x32xf32>
    %62 = arith.mulf %57, %59 : vector<8x32xf32>
    %63 = arith.addf %61, %62 : vector<8x32xf32>
    %64 = math.tanh %63 : vector<8x32xf32>
    %65 = arith.mulf %60, %64 : vector<8x32xf32>
    %66 = vector.extract_strided_slice %6 {offsets = [3, 0, 0], sizes = [1, 8, 128], strides = [1, 1, 1]} : vector<8x8x128xf32> to vector<1x8x128xf32>
    %67 = vector.shape_cast %66 : vector<1x8x128xf32> to vector<8x128xf32>
    %cst_18 = arith.constant dense<0.000000e+00> : vector<8x128xf32>
    %68 = tpu.matmul %65, %7, %cst_18 {dimension_numbers = #tpu.dot_dimension_numbers<[1], [0], [0], [1], [0, 0, 1, 1], [], []>} : vector<8x32xf32>, vector<32x128xf32>, vector<8x128xf32> -> vector<8x128xf32>
    %69 = arith.addf %67, %68 : vector<8x128xf32>
    %cst_19 = arith.constant 5.000000e-01 : f32
    %70 = vector.broadcast %cst_19 : f32 to vector<8x128xf32>
    %71 = arith.mulf %70, %69 : vector<8x128xf32>
    %72 = math.tanh %71 : vector<8x128xf32>
    %cst_20 = arith.constant 5.000000e-01 : f32
    %73 = vector.broadcast %cst_20 : f32 to vector<8x128xf32>
    %74 = arith.mulf %73, %72 : vector<8x128xf32>
    %cst_21 = arith.constant 5.000000e-01 : f32
    %75 = vector.broadcast %cst_21 : f32 to vector<8x128xf32>
    %76 = arith.addf %75, %74 : vector<8x128xf32>
    %77 = math.tanh %69 : vector<8x128xf32>
    %78 = vector.extract_strided_slice %76 {offsets = [0, 0], sizes = [8, 32], strides = [1, 1]} : vector<8x128xf32> to vector<8x32xf32>
    %79 = vector.extract_strided_slice %76 {offsets = [0, 32], sizes = [8, 32], strides = [1, 1]} : vector<8x128xf32> to vector<8x32xf32>
    %80 = vector.extract_strided_slice %77 {offsets = [0, 64], sizes = [8, 32], strides = [1, 1]} : vector<8x128xf32> to vector<8x32xf32>
    %81 = vector.extract_strided_slice %76 {offsets = [0, 96], sizes = [8, 32], strides = [1, 1]} : vector<8x128xf32> to vector<8x32xf32>
    %82 = arith.mulf %79, %63 : vector<8x32xf32>
    %83 = arith.mulf %78, %80 : vector<8x32xf32>
    %84 = arith.addf %82, %83 : vector<8x32xf32>
    %85 = math.tanh %84 : vector<8x32xf32>
    %86 = arith.mulf %81, %85 : vector<8x32xf32>
    %87 = vector.extract_strided_slice %6 {offsets = [4, 0, 0], sizes = [1, 8, 128], strides = [1, 1, 1]} : vector<8x8x128xf32> to vector<1x8x128xf32>
    %88 = vector.shape_cast %87 : vector<1x8x128xf32> to vector<8x128xf32>
    %cst_22 = arith.constant dense<0.000000e+00> : vector<8x128xf32>
    %89 = tpu.matmul %86, %7, %cst_22 {dimension_numbers = #tpu.dot_dimension_numbers<[1], [0], [0], [1], [0, 0, 1, 1], [], []>} : vector<8x32xf32>, vector<32x128xf32>, vector<8x128xf32> -> vector<8x128xf32>
    %90 = arith.addf %88, %89 : vector<8x128xf32>
    %cst_23 = arith.constant 5.000000e-01 : f32
    %91 = vector.broadcast %cst_23 : f32 to vector<8x128xf32>
    %92 = arith.mulf %91, %90 : vector<8x128xf32>
    %93 = math.tanh %92 : vector<8x128xf32>
    %cst_24 = arith.constant 5.000000e-01 : f32
    %94 = vector.broadcast %cst_24 : f32 to vector<8x128xf32>
    %95 = arith.mulf %94, %93 : vector<8x128xf32>
    %cst_25 = arith.constant 5.000000e-01 : f32
    %96 = vector.broadcast %cst_25 : f32 to vector<8x128xf32>
    %97 = arith.addf %96, %95 : vector<8x128xf32>
    %98 = math.tanh %90 : vector<8x128xf32>
    %99 = vector.extract_strided_slice %97 {offsets = [0, 0], sizes = [8, 32], strides = [1, 1]} : vector<8x128xf32> to vector<8x32xf32>
    %100 = vector.extract_strided_slice %97 {offsets = [0, 32], sizes = [8, 32], strides = [1, 1]} : vector<8x128xf32> to vector<8x32xf32>
    %101 = vector.extract_strided_slice %98 {offsets = [0, 64], sizes = [8, 32], strides = [1, 1]} : vector<8x128xf32> to vector<8x32xf32>
    %102 = vector.extract_strided_slice %97 {offsets = [0, 96], sizes = [8, 32], strides = [1, 1]} : vector<8x128xf32> to vector<8x32xf32>
    %103 = arith.mulf %100, %84 : vector<8x32xf32>
    %104 = arith.mulf %99, %101 : vector<8x32xf32>
    %105 = arith.addf %103, %104 : vector<8x32xf32>
    %106 = math.tanh %105 : vector<8x32xf32>
    %107 = arith.mulf %102, %106 : vector<8x32xf32>
    %108 = vector.extract_strided_slice %6 {offsets = [5, 0, 0], sizes = [1, 8, 128], strides = [1, 1, 1]} : vector<8x8x128xf32> to vector<1x8x128xf32>
    %109 = vector.shape_cast %108 : vector<1x8x128xf32> to vector<8x128xf32>
    %cst_26 = arith.constant dense<0.000000e+00> : vector<8x128xf32>
    %110 = tpu.matmul %107, %7, %cst_26 {dimension_numbers = #tpu.dot_dimension_numbers<[1], [0], [0], [1], [0, 0, 1, 1], [], []>} : vector<8x32xf32>, vector<32x128xf32>, vector<8x128xf32> -> vector<8x128xf32>
    %111 = arith.addf %109, %110 : vector<8x128xf32>
    %cst_27 = arith.constant 5.000000e-01 : f32
    %112 = vector.broadcast %cst_27 : f32 to vector<8x128xf32>
    %113 = arith.mulf %112, %111 : vector<8x128xf32>
    %114 = math.tanh %113 : vector<8x128xf32>
    %cst_28 = arith.constant 5.000000e-01 : f32
    %115 = vector.broadcast %cst_28 : f32 to vector<8x128xf32>
    %116 = arith.mulf %115, %114 : vector<8x128xf32>
    %cst_29 = arith.constant 5.000000e-01 : f32
    %117 = vector.broadcast %cst_29 : f32 to vector<8x128xf32>
    %118 = arith.addf %117, %116 : vector<8x128xf32>
    %119 = math.tanh %111 : vector<8x128xf32>
    %120 = vector.extract_strided_slice %118 {offsets = [0, 0], sizes = [8, 32], strides = [1, 1]} : vector<8x128xf32> to vector<8x32xf32>
    %121 = vector.extract_strided_slice %118 {offsets = [0, 32], sizes = [8, 32], strides = [1, 1]} : vector<8x128xf32> to vector<8x32xf32>
    %122 = vector.extract_strided_slice %119 {offsets = [0, 64], sizes = [8, 32], strides = [1, 1]} : vector<8x128xf32> to vector<8x32xf32>
    %123 = vector.extract_strided_slice %118 {offsets = [0, 96], sizes = [8, 32], strides = [1, 1]} : vector<8x128xf32> to vector<8x32xf32>
    %124 = arith.mulf %121, %105 : vector<8x32xf32>
    %125 = arith.mulf %120, %122 : vector<8x32xf32>
    %126 = arith.addf %124, %125 : vector<8x32xf32>
    %127 = math.tanh %126 : vector<8x32xf32>
    %128 = arith.mulf %123, %127 : vector<8x32xf32>
    %129 = vector.extract_strided_slice %6 {offsets = [6, 0, 0], sizes = [1, 8, 128], strides = [1, 1, 1]} : vector<8x8x128xf32> to vector<1x8x128xf32>
    %130 = vector.shape_cast %129 : vector<1x8x128xf32> to vector<8x128xf32>
    %cst_30 = arith.constant dense<0.000000e+00> : vector<8x128xf32>
    %131 = tpu.matmul %128, %7, %cst_30 {dimension_numbers = #tpu.dot_dimension_numbers<[1], [0], [0], [1], [0, 0, 1, 1], [], []>} : vector<8x32xf32>, vector<32x128xf32>, vector<8x128xf32> -> vector<8x128xf32>
    %132 = arith.addf %130, %131 : vector<8x128xf32>
    %cst_31 = arith.constant 5.000000e-01 : f32
    %133 = vector.broadcast %cst_31 : f32 to vector<8x128xf32>
    %134 = arith.mulf %133, %132 : vector<8x128xf32>
    %135 = math.tanh %134 : vector<8x128xf32>
    %cst_32 = arith.constant 5.000000e-01 : f32
    %136 = vector.broadcast %cst_32 : f32 to vector<8x128xf32>
    %137 = arith.mulf %136, %135 : vector<8x128xf32>
    %cst_33 = arith.constant 5.000000e-01 : f32
    %138 = vector.broadcast %cst_33 : f32 to vector<8x128xf32>
    %139 = arith.addf %138, %137 : vector<8x128xf32>
    %140 = math.tanh %132 : vector<8x128xf32>
    %141 = vector.extract_strided_slice %139 {offsets = [0, 0], sizes = [8, 32], strides = [1, 1]} : vector<8x128xf32> to vector<8x32xf32>
    %142 = vector.extract_strided_slice %139 {offsets = [0, 32], sizes = [8, 32], strides = [1, 1]} : vector<8x128xf32> to vector<8x32xf32>
    %143 = vector.extract_strided_slice %140 {offsets = [0, 64], sizes = [8, 32], strides = [1, 1]} : vector<8x128xf32> to vector<8x32xf32>
    %144 = vector.extract_strided_slice %139 {offsets = [0, 96], sizes = [8, 32], strides = [1, 1]} : vector<8x128xf32> to vector<8x32xf32>
    %145 = arith.mulf %142, %126 : vector<8x32xf32>
    %146 = arith.mulf %141, %143 : vector<8x32xf32>
    %147 = arith.addf %145, %146 : vector<8x32xf32>
    %148 = math.tanh %147 : vector<8x32xf32>
    %149 = arith.mulf %144, %148 : vector<8x32xf32>
    %150 = vector.extract_strided_slice %6 {offsets = [7, 0, 0], sizes = [1, 8, 128], strides = [1, 1, 1]} : vector<8x8x128xf32> to vector<1x8x128xf32>
    %151 = vector.shape_cast %150 : vector<1x8x128xf32> to vector<8x128xf32>
    %cst_34 = arith.constant dense<0.000000e+00> : vector<8x128xf32>
    %152 = tpu.matmul %149, %7, %cst_34 {dimension_numbers = #tpu.dot_dimension_numbers<[1], [0], [0], [1], [0, 0, 1, 1], [], []>} : vector<8x32xf32>, vector<32x128xf32>, vector<8x128xf32> -> vector<8x128xf32>
    %153 = arith.addf %151, %152 : vector<8x128xf32>
    %cst_35 = arith.constant 5.000000e-01 : f32
    %154 = vector.broadcast %cst_35 : f32 to vector<8x128xf32>
    %155 = arith.mulf %154, %153 : vector<8x128xf32>
    %156 = math.tanh %155 : vector<8x128xf32>
    %cst_36 = arith.constant 5.000000e-01 : f32
    %157 = vector.broadcast %cst_36 : f32 to vector<8x128xf32>
    %158 = arith.mulf %157, %156 : vector<8x128xf32>
    %cst_37 = arith.constant 5.000000e-01 : f32
    %159 = vector.broadcast %cst_37 : f32 to vector<8x128xf32>
    %160 = arith.addf %159, %158 : vector<8x128xf32>
    %161 = math.tanh %153 : vector<8x128xf32>
    %162 = vector.extract_strided_slice %160 {offsets = [0, 0], sizes = [8, 32], strides = [1, 1]} : vector<8x128xf32> to vector<8x32xf32>
    %163 = vector.extract_strided_slice %160 {offsets = [0, 32], sizes = [8, 32], strides = [1, 1]} : vector<8x128xf32> to vector<8x32xf32>
    %164 = vector.extract_strided_slice %161 {offsets = [0, 64], sizes = [8, 32], strides = [1, 1]} : vector<8x128xf32> to vector<8x32xf32>
    %165 = vector.extract_strided_slice %160 {offsets = [0, 96], sizes = [8, 32], strides = [1, 1]} : vector<8x128xf32> to vector<8x32xf32>
    %166 = arith.mulf %163, %147 : vector<8x32xf32>
    %167 = arith.mulf %162, %164 : vector<8x32xf32>
    %168 = arith.addf %166, %167 : vector<8x32xf32>
    %169 = math.tanh %168 : vector<8x32xf32>
    %170 = arith.mulf %165, %169 : vector<8x32xf32>
    %171 = vector.extract_strided_slice %0 {offsets = [56, 0], sizes = [8, 32], strides = [1, 1]} : vector<64x32xf32> to vector<8x32xf32>
    %c0_38 = arith.constant 0 : index
    %c0_39 = arith.constant 0 : index
    %172 = vector.load %arg4[%c0_38, %c0_39] : memref<32x128xf32, #tpu.memory_space<vmem>>, vector<32x128xf32>
    %cst_40 = arith.constant dense<0.000000e+00> : vector<8x128xf32>
    %173 = tpu.matmul %171, %172, %cst_40 {dimension_numbers = #tpu.dot_dimension_numbers<[1], [0], [0], [1], [0, 0, 1, 1], [], []>} : vector<8x32xf32>, vector<32x128xf32>, vector<8x128xf32> -> vector<8x128xf32>
    %c0_41 = arith.constant 0 : index
    %c0_42 = arith.constant 0 : index
    %174 = vector.load %arg5[%c0_41, %c0_42] : memref<1x128xf32, #tpu.memory_space<vmem>>, vector<1x128xf32>
    %175 = vector.broadcast %174 : vector<1x128xf32> to vector<8x128xf32>
    %176 = arith.addf %173, %175 : vector<8x128xf32>
    %cst_43 = arith.constant 5.000000e-01 : f32
    %177 = vector.broadcast %cst_43 : f32 to vector<8x128xf32>
    %178 = arith.mulf %177, %176 : vector<8x128xf32>
    %179 = math.tanh %178 : vector<8x128xf32>
    %cst_44 = arith.constant 5.000000e-01 : f32
    %180 = vector.broadcast %cst_44 : f32 to vector<8x128xf32>
    %181 = arith.mulf %180, %179 : vector<8x128xf32>
    %cst_45 = arith.constant 5.000000e-01 : f32
    %182 = vector.broadcast %cst_45 : f32 to vector<8x128xf32>
    %183 = arith.addf %182, %181 : vector<8x128xf32>
    %184 = math.tanh %176 : vector<8x128xf32>
    %185 = vector.extract_strided_slice %183 {offsets = [0, 0], sizes = [8, 32], strides = [1, 1]} : vector<8x128xf32> to vector<8x32xf32>
    %186 = vector.extract_strided_slice %184 {offsets = [0, 64], sizes = [8, 32], strides = [1, 1]} : vector<8x128xf32> to vector<8x32xf32>
    %187 = vector.extract_strided_slice %183 {offsets = [0, 96], sizes = [8, 32], strides = [1, 1]} : vector<8x128xf32> to vector<8x32xf32>
    %188 = arith.mulf %185, %186 : vector<8x32xf32>
    %189 = math.tanh %188 : vector<8x32xf32>
    %190 = arith.mulf %187, %189 : vector<8x32xf32>
    %c0_46 = arith.constant 0 : index
    %c0_47 = arith.constant 0 : index
    %191 = vector.load %arg6[%c0_46, %c0_47] : memref<64x128xf32, #tpu.memory_space<vmem>>, vector<64x128xf32>
    %192 = vector.extract_strided_slice %191 {offsets = [0, 0], sizes = [32, 128], strides = [1, 1]} : vector<64x128xf32> to vector<32x128xf32>
    %cst_48 = arith.constant dense<0.000000e+00> : vector<8x128xf32>
    %193 = tpu.matmul %170, %192, %cst_48 {dimension_numbers = #tpu.dot_dimension_numbers<[1], [0], [0], [1], [0, 0, 1, 1], [], []>} : vector<8x32xf32>, vector<32x128xf32>, vector<8x128xf32> -> vector<8x128xf32>
    %194 = vector.extract_strided_slice %191 {offsets = [32, 0], sizes = [32, 128], strides = [1, 1]} : vector<64x128xf32> to vector<32x128xf32>
    %cst_49 = arith.constant dense<0.000000e+00> : vector<8x128xf32>
    %195 = tpu.matmul %190, %194, %cst_49 {dimension_numbers = #tpu.dot_dimension_numbers<[1], [0], [0], [1], [0, 0, 1, 1], [], []>} : vector<8x32xf32>, vector<32x128xf32>, vector<8x128xf32> -> vector<8x128xf32>
    %196 = arith.addf %193, %195 : vector<8x128xf32>
    %cst_50 = arith.constant 0.000000e+00 : f32
    %197 = vector.broadcast %cst_50 : f32 to vector<8x128xf32>
    %198 = arith.cmpf oge, %196, %197 : vector<8x128xf32>
    %cst_51 = arith.constant 0.00999999977 : f32
    %199 = vector.broadcast %cst_51 : f32 to vector<8x128xf32>
    %200 = arith.mulf %199, %196 : vector<8x128xf32>
    %201 = arith.select %198, %196, %200 : vector<8x128xi1>, vector<8x128xf32>
    %c0_52 = arith.constant 0 : index
    %c0_53 = arith.constant 0 : index
    %202 = vector.load %arg7[%c0_52, %c0_53] : memref<8x128xf32, #tpu.memory_space<vmem>>, vector<8x128xf32>
    tpu.vector_store %arg7[%c0_52, %c0_53], %201 {strides = array<i32>} : memref<8x128xf32, #tpu.memory_space<vmem>>, vector<8x128xf32>,
    return
  }
}

</mosaic_0001>

<bundles_post_ra>
// kernel: lstm_forward.1
= control target key start
LH: loop header
LB: loop body
LE: loop exit
PB: predicated region body
PF: predicated region fallthrough
CT: control target
= control target key end

     0   :  { %vm45_vm0 = vcmask 261120   ;;  %s1494_s14 = smov 64   ;;  %v1495_v22 = vmov 0.0|0.0   ;;  %vm1496_vm1 = vmmov 0   ;;  %v1497_v30 = vmov 0.0   ;;  %s1499_s30 = smov 32   ;;  %s1773_s1 = inlined_call_operand.vmem [shape: f32[32,128], index: 1, kind: input, shape index: {}]   ;;  %s1774_s0 = inlined_call_operand.vmem [shape: f32[64,32], index: 0, kind: input, shape index: {}]   ;;  %s1775_s3 = inlined_call_operand.vmem [shape: f32[1,128], index: 3, kind: input, shape index: {}]   ;;  %s1776_s2 = inlined_call_operand.vmem [shape: f32[32,128], index: 2, kind: input, shape index: {}]   ;;  %s1777_s4 = inlined_call_operand.vmem [shape: f32[32,128], index: 4, kind: input, shape index: {}]   ;;  %s1778_s5 = inlined_call_operand.vmem [shape: f32[1,128], index: 5, kind: input, shape index: {}]   ;;  %s1779_s6 = inlined_call_operand.vmem [shape: f32[64,128], index: 6, kind: input, shape index: {}]   ;;  %s1780_s7 = inlined_call_operand.vmem [shape: f32[8,128], index: 7, kind: output, shape index: {}]  }
   0x1   :  { %v34_v0 = vld [vmem:[%s1773_s1] sm:$0xff]  ;;  %v35_v1 = vld [vmem:[%s1773_s1 + $0x8] sm:$0xff]  ;;  %v36_v2 = vld [vmem:[%s1773_s1 + $0x10] sm:$0xff] }
   0x2   :  { %v1360_v3 = vpack.c.bf16 %v35_v1, %v34_v0  ;;  %v37_v4 = vld [vmem:[%s1773_s1 + $0x18] sm:$0xff]  ;;  %v26_v5 = vld [vmem:[%s1774_s0] sm:$0xff]  ;;  %v27_v7 = vld [vmem:[%s1774_s0 + $0x8] sm:$0xff] }
   0x3   :  { %v1364_v6 = vpack.c.bf16 %v37_v4, %v36_v2  ;;  %1238 = vmatprep.mubr.msk.f32.mxu0 %vm45_vm0, %v26_v5  ;;  %v1563_v8 = vld [vmem:[%s1775_s3] ss:$0 sm:$0xff]  ;;  %v31_v20 = vld [vmem:[%s1774_s0 + $0x28] sm:$0xff]  ;;  %v32_v21 = vld [vmem:[%s1774_s0 + $0x30] sm:$0xff] }
   0x4   :  { %1361 = vmatprep.subr.bf16.mxu0 %v1360_v3  ;;  %1428 = vmatprep.subr.bf16.mxu1 %v1360_v3  ;;  %v30_v19 = vld [vmem:[%s1774_s0 + $0x20] sm:$0xff]  ;;  %v176_v24 = vld [vmem:[%s1776_s2 + $0x8] sm:$0xff]  ;;  %v177_v26 = vld [vmem:[%s1776_s2 + $0x10] sm:$0xff] }
   0x5   :  { %1363 = vmatpush3.bf16.msra.mxu0 %v1360_v3  ;;  %1430 = vmatpush3.bf16.msra.mxu1 %v1360_v3  ;;  %v175_v23 = vld [vmem:[%s1776_s2] sm:$0xff]  ;;  %v178_v27 = vld [vmem:[%s1776_s2 + $0x18] sm:$0xff]  ;;  %s1498_s2 = smov 96   ;;  %v28_v54 = vld [vmem:[%s1774_s0 + $0x10] sm:$0xff] }
   0x6   :  { %1365 = vmatprep.subr.bf16.mxu0 %v1364_v6  ;;  %1429 = vmatprep.subr.bf16.mxu1 %v1364_v6  ;;  %v1587_v25 = vpack.c.bf16 %v176_v24, %v175_v23  ;;  %v1600_v28 = vld [vmem:[%s1774_s0 + $0x38] sm:$0xff]  ;;  %v1603_v29 = vpack.c.bf16 %v178_v27, %v177_v26 }
   0x7   :  { %1244 = vmatprep.mubr.msk.f32.mxu1 %vm45_vm0, %v30_v19  ;;  %v29_v55 = vld [vmem:[%s1774_s0 + $0x18] sm:$0xff] }
   0x9   :  { %1367 = vmatpush3.bf16.msra.mxu0 %v1364_v6  ;;  %1431 = vmatpush3.bf16.msra.mxu1 %v1364_v6 }
   0xa   :  { %1368 = vmatprep.subr.bf16.mxu1 %v1495_v22  ;;  %1380 = vmatprep.subr.bf16.mxu0 %v1495_v22 }
   0xc   :  { %1239 = vmatmul.mubr.msk.f32.vlgmr.msra.gmra.mrb[0].mxu0 %vm45_vm0, %v27_v7  ;;  %1245 = vmatmul.mubr.msk.f32.vlgmr.msra.gmra.mrb[0].mxu1 %vm45_vm0, %v31_v20 }
   0xd   :  { %1247 = vmatprep.mubr.msk.f32.mxu1 %vm45_vm0, %v32_v21  ;;  %1370 = vmatpush3.bf16.msra.mxu1 %v1587_v25 }
   0xe   :  { %1382 = vmatpush3.bf16.msra.mxu0 %v1587_v25  ;;  %1371 = vmatprep.subr.bf16.mxu1 %v1495_v22 }
   0xf   :  { %1383 = vmatprep.subr.bf16.mxu0 %v1495_v22  ;;  %1241 = vmatprep.mubr.msk.f32.mxu0 %vm45_vm0, %v28_v54 }
  0x10   :  { %1248 = vmatmul.mubr.msk.f32.gmra.mrb[2].mxu1 %vm45_vm0, %v1600_v28  ;;  %1242 = vmatmul.mubr.msk.f32.gmra.mrb[2].mxu0 %vm45_vm0, %v29_v55 }
  0x11   :  { %1258 = vmatprep.mubr.msk.f32.mxu1 %vm1496_vm1, %v1497_v30  ;;  %1373 = vmatpush3.bf16.msra.mxu1 %v1603_v29 }
  0x12   :  { %1385 = vmatpush3.bf16.msra.mxu0 %v1603_v29  ;;  %1374 = vmatprep.subr.bf16.mxu1 %v1495_v22 }
  0x13   :  { %1392 = vmatprep.subr.bf16.mxu0 %v1495_v22  ;;  %1280 = vmatprep.mubr.msk.f32.mxu0 %vm1496_vm1, %v1497_v30 }
  0xdf   :  { %v1565_v9 = vpop.f32.mrb[0].mxu0  ;;  %v1619_v34 = vpop.f32.mrb[0].mxu1 }
  0xe0   :  { %v136_v10 = vpop.f32.mrb[1].mxu0  ;;  %v1621_v35 = vpop.f32.mrb[1].mxu1  ;;  %v142_v39 = vadd.f32 %v1565_v9, %v1563_v8 }
  0xe1   :  { %v137_v11 = vadd.f32 %v1563_v8, %v136_v10 }
  0xe3   :  { %1440 = vtanh.f32 %v137_v11  ;;  %v179_v13 = vmul.f32 0.5, %v137_v11  ;;  %v1623_v36 = vpop.f32.mrb[2].mxu1  ;;  %v1243_v59 = vpop.f32.mrb[2].mxu0 }
  0xe4   :  { %v1625_v37 = vpop.f32.mrb[3].mxu1  ;;  %v146_v60 = vpop.f32.mrb[3].mxu0 }
  0xe5   :  { %1442 = vtanh.f32 %v179_v13  ;;  %v147_v62 = vadd.f32 %v1563_v8, %v146_v60 }
  0xed   :  { %v1441_v12 = vpop.eup %1440 }
  0xee   :  { %185 = vrot.lane.b32.xlu0 %v1441_v12, %s1494_s14 }
  0xef   :  { %v1443_v14 = vpop.eup %1442 }
  0xf0   :  { %v181_v15 = vmul.f32 0.5, %v1443_v14 }
  0xf2   :  { %v182_v16 = vadd.f32 0.5, %v181_v15 }
 0x160   :  { %v186_v17 = vpop.permute.xlu0 %185 }
 0x161   :  { %v188_v18 = vmul.f32 %v186_v17, %v182_v16  ;;  %v152_v17 = vadd.f32 %v1243_v59, %v1563_v8 }
 0x163   :  { %1444 = vtanh.f32 %v188_v18 }
 0x16d   :  { %v1445_v31 = vpop.eup %1444 }
 0x16e   :  { %191 = vrot.lane.b32.xlu0 %v1445_v31, %s1498_s2 }
 0x172   :  { %277 = vrot.lane.b32.xlu0 %v188_v18, %s1499_s30 }
 0x1e0   :  { %v192_v32 = vpop.permute.xlu0 %191 }
 0x1e1   :  { %v194_v33 = vmul.f32 %v192_v32, %v182_v16 }
 0x1e3   :  { %196 = vrot.lane.b32.xlu1 %v194_v33, %s1499_s30 }
 0x1e4   :  { %v278_v50 = vpop.permute.xlu0 %277 }
 0x255   :  { %v197_v38 = vpop.permute.xlu1 %196 }
 0x256   :  { %1259 = vmatmul.mubr.msk.f32.vlgmr.msra.gmra.mrb[4].mxu1 %vm45_vm0, %v197_v38 }
 0x257   :  { %1376 = vmatpush3.bf16.msra.mxu1 %v1587_v25  ;;  %1269 = vmatprep.mubr.msk.f32.mxu1 %vm1496_vm1, %v1497_v30 }
 0x258   :  { %1377 = vmatprep.subr.bf16.mxu1 %v1495_v22 }
 0x25b   :  { %1379 = vmatpush3.bf16.msra.mxu1 %v1603_v29 }
 0x25c   :  { %1386 = vmatprep.subr.bf16.mxu1 %v1495_v22 }
 0x329   :  { %v266_v40 = vpop.f32.mrb[4].mxu1 }
 0x32a   :  { %v270_v41 = vadd.f32 %v266_v40, %v142_v39  ;;  %v1260_v42 = vpop.f32.mrb[5].mxu1 }
 0x32c   :  { %1446 = vtanh.f32 %v270_v41  ;;  %v271_v44 = vmul.f32 0.5, %v270_v41 }
 0x32e   :  { %1448 = vtanh.f32 %v271_v44  ;;  %v157_v44 = vadd.f32 %v1563_v8, %v1621_v35 }
 0x336   :  { %v1447_v43 = vpop.eup %1446 }
 0x337   :  { %282 = vrot.lane.b32.xlu1 %v1447_v43, %s1494_s14 }
 0x338   :  { %v1449_v45 = vpop.eup %1448 }
 0x339   :  { %v273_v46 = vmul.f32 0.5, %v1449_v45 }
 0x33b   :  { %v274_v47 = vadd.f32 0.5, %v273_v46 }
 0x33d   :  { %v280_v51 = vmul.f32 %v278_v50, %v274_v47 }
 0x3a9   :  { %v283_v48 = vpop.permute.xlu1 %282 }
 0x3aa   :  { %v285_v49 = vmul.f32 %v283_v48, %v274_v47 }
 0x3ac   :  { %287 = vrot.lane.b32.xlu1 %v285_v49, %s1499_s30 }
 0x41e   :  { %v288_v52 = vpop.permute.xlu1 %287 }
 0x41f   :  { %v290_v53 = vadd.f32 %v288_v52, %v280_v51 }
 0x421   :  { %1450 = vtanh.f32 %v290_v53 }
 0x42b   :  { %v1451_v56 = vpop.eup %1450 }
 0x42c   :  { %293 = vrot.lane.b32.xlu0 %v1451_v56, %s1494_s14 }
 0x49e   :  { %v294_v57 = vpop.permute.xlu0 %293 }
 0x49f   :  { %v296_v58 = vmul.f32 %v294_v57, %v274_v47 }
 0x4a1   :  { %298 = vrot.lane.b32.xlu1 %v296_v58, %s1499_s30 }
 0x513   :  { %v299_v61 = vpop.permute.xlu1 %298 }
 0x514   :  { %1270 = vmatmul.mubr.msk.f32.vlgmr.msra.gmra.mrb[6].mxu1 %vm45_vm0, %v299_v61  ;;  %v162_v61 = vadd.f32 %v1619_v34, %v1563_v8 }
 0x515   :  { %1388 = vmatpush3.bf16.msra.mxu1 %v1587_v25  ;;  %1291 = vmatprep.mubr.msk.f32.mxu1 %vm1496_vm1, %v1497_v30 }
 0x516   :  { %1389 = vmatprep.subr.bf16.mxu1 %v1495_v22 }
 0x519   :  { %1391 = vmatpush3.bf16.msra.mxu1 %v1603_v29 }
 0x51a   :  { %1398 = vmatprep.subr.bf16.mxu1 %v1495_v22 }
 0x5e7   :  { %v368_v63 = vpop.f32.mrb[6].mxu1 }
 0x5e8   :  { %v372_v0 = vadd.f32 %v368_v63, %v147_v62  ;;  %v1271_v1 = vpop.f32.mrb[7].mxu1 }
 0x5ea   :  { %1452 = vtanh.f32 %v372_v0  ;;  %v373_v3 = vmul.f32 0.5, %v372_v0 }
 0x5ec   :  { %1454 = vtanh.f32 %v373_v3 }
 0x5f4   :  { %v1453_v2 = vpop.eup %1452 }
 0x5f5   :  { %380 = vrot.lane.b32.xlu0 %v1453_v2, %s1494_s14 }
 0x5f6   :  { %v1455_v4 = vpop.eup %1454 }
 0x5f7   :  { %v375_v5 = vmul.f32 0.5, %v1455_v4 }
 0x5f9   :  { %v376_v6 = vadd.f32 0.5, %v375_v5 }
 0x5fb   :  { %v378_v10 = vmul.f32 %v376_v6, %v290_v53 }
 0x667   :  { %v381_v7 = vpop.permute.xlu0 %380 }
 0x668   :  { %v383_v9 = vmul.f32 %v381_v7, %v376_v6 }
 0x66a   :  { %385 = vrot.lane.b32.xlu1 %v383_v9, %s1499_s30 }
 0x6dc   :  { %v386_v11 = vpop.permute.xlu1 %385 }
 0x6dd   :  { %v388_v12 = vadd.f32 %v386_v11, %v378_v10 }
 0x6df   :  { %1456 = vtanh.f32 %v388_v12 }
 0x6e9   :  { %v1457_v13 = vpop.eup %1456 }
 0x6ea   :  { %391 = vrot.lane.b32.xlu0 %v1457_v13, %s1494_s14  ;;  %v167_v13 = vadd.f32 %v1563_v8, %v1625_v37  ;;  %v885_v37 = vld [vmem:[%s1777_s4] sm:$0xff] }
 0x75c   :  { %v392_v14 = vpop.permute.xlu0 %391 }
 0x75d   :  { %v394_v15 = vmul.f32 %v392_v14, %v376_v6 }
 0x75f   :  { %396 = vrot.lane.b32.xlu1 %v394_v15, %s1499_s30 }
 0x7d1   :  { %v397_v16 = vpop.permute.xlu1 %396 }
 0x7d2   :  { %1281 = vmatmul.mubr.msk.f32.vlgmr.msra.gmra.mrb[4].mxu0 %vm45_vm0, %v397_v16 }
 0x7d3   :  { %1394 = vmatpush3.bf16.msra.mxu0 %v1587_v25  ;;  %1302 = vmatprep.mubr.msk.f32.mxu0 %vm1496_vm1, %v1497_v30 }
 0x7d4   :  { %1395 = vmatprep.subr.bf16.mxu0 %v1495_v22 }
 0x7d7   :  { %1397 = vmatpush3.bf16.msra.mxu0 %v1603_v29 }
 0x7d8   :  { %1404 = vmatprep.subr.bf16.mxu0 %v1495_v22 }
 0x8a5   :  { %v466_v18 = vpop.f32.mrb[4].mxu0 }
 0x8a6   :  { %v470_v19 = vadd.f32 %v466_v18, %v152_v17  ;;  %v1282_v20 = vpop.f32.mrb[5].mxu0 }
 0x8a8   :  { %1458 = vtanh.f32 %v470_v19  ;;  %v471_v23 = vmul.f32 0.5, %v470_v19 }
 0x8aa   :  { %1460 = vtanh.f32 %v471_v23 }
 0x8b2   :  { %v1459_v21 = vpop.eup %1458 }
 0x8b3   :  { %478 = vrot.lane.b32.xlu0 %v1459_v21, %s1494_s14 }
 0x8b4   :  { %v1461_v24 = vpop.eup %1460 }
 0x8b5   :  { %v473_v26 = vmul.f32 0.5, %v1461_v24 }
 0x8b7   :  { %v474_v27 = vadd.f32 0.5, %v473_v26  ;;  %v886_v26 = vld [vmem:[%s1777_s4 + $0x8] sm:$0xff] }
 0x8b9   :  { %v476_v33 = vmul.f32 %v474_v27, %v388_v12 }
 0x925   :  { %v479_v31 = vpop.permute.xlu0 %478 }
 0x926   :  { %v481_v32 = vmul.f32 %v479_v31, %v474_v27  ;;  %v1411_v31 = vpack.c.bf16 %v886_v26, %v885_v37 }
 0x928   :  { %483 = vrot.lane.b32.xlu1 %v481_v32, %s1499_s30  ;;  %v888_v32 = vld [vmem:[%s1777_s4 + $0x18] sm:$0xff] }
 0x99a   :  { %v484_v38 = vpop.permute.xlu1 %483 }
 0x99b   :  { %v486_v39 = vadd.f32 %v484_v38, %v476_v33 }
 0x99d   :  { %1462 = vtanh.f32 %v486_v39 }
 0x9a7   :  { %v1463_v40 = vpop.eup %1462 }
 0x9a8   :  { %489 = vrot.lane.b32.xlu0 %v1463_v40, %s1494_s14 }
 0xa1a   :  { %v490_v41 = vpop.permute.xlu0 %489 }
 0xa1b   :  { %v492_v42 = vmul.f32 %v490_v41, %v474_v27  ;;  %v887_v27 = vld [vmem:[%s1777_s4 + $0x10] sm:$0xff] }
 0xa1c   :  { %v1414_v33 = vpack.c.bf16 %v888_v32, %v887_v27 }
 0xa1d   :  { %494 = vrot.lane.b32.xlu1 %v492_v42, %s1499_s30 }
 0xa8f   :  { %v495_v43 = vpop.permute.xlu1 %494 }
 0xa90   :  { %1292 = vmatmul.mubr.msk.f32.vlgmr.msra.gmra.mrb[8].mxu1 %vm45_vm0, %v495_v43  ;;  %v1164_v43 = vld [vmem:[%s1778_s5] ss:$0 sm:$0xff] }
 0xa91   :  { %1400 = vmatpush3.bf16.msra.mxu1 %v1587_v25  ;;  %1313 = vmatprep.mubr.msk.f32.mxu1 %vm1496_vm1, %v1497_v30 }
 0xa92   :  { %1401 = vmatprep.subr.bf16.mxu1 %v1495_v22 }
 0xa95   :  { %1403 = vmatpush3.bf16.msra.mxu1 %v1603_v29 }
 0xa96   :  { %1410 = vmatprep.subr.bf16.mxu1 %v1495_v22 }
 0xb63   :  { %v564_v45 = vpop.f32.mrb[8].mxu1 }
 0xb64   :  { %v568_v46 = vadd.f32 %v564_v45, %v157_v44  ;;  %v1293_v47 = vpop.f32.mrb[9].mxu1 }
 0xb66   :  { %1464 = vtanh.f32 %v568_v46  ;;  %v569_v49 = vmul.f32 0.5, %v568_v46 }
 0xb68   :  { %1466 = vtanh.f32 %v569_v49 }
 0xb70   :  { %v1465_v48 = vpop.eup %1464 }
 0xb71   :  { %576 = vrot.lane.b32.xlu0 %v1465_v48, %s1494_s14 }
 0xb72   :  { %v1467_v50 = vpop.eup %1466 }
 0xb73   :  { %v571_v51 = vmul.f32 0.5, %v1467_v50 }
 0xb75   :  { %v572_v52 = vadd.f32 0.5, %v571_v51 }
 0xb77   :  { %v574_v55 = vmul.f32 %v572_v52, %v486_v39 }
 0xbe3   :  { %v577_v53 = vpop.permute.xlu0 %576 }
 0xbe4   :  { %v579_v54 = vmul.f32 %v577_v53, %v572_v52 }
 0xbe6   :  { %581 = vrot.lane.b32.xlu1 %v579_v54, %s1499_s30 }
 0xc58   :  { %v582_v56 = vpop.permute.xlu1 %581 }
 0xc59   :  { %v584_v57 = vadd.f32 %v582_v56, %v574_v55  ;;  %v172_v56 = vadd.f32 %v1623_v36, %v1563_v8  ;;  %v988_v8 = vld [vmem:[%s1779_s6 + $0x30] sm:$0xff] }
 0xc5b   :  { %1468 = vtanh.f32 %v584_v57 }
 0xc65   :  { %v1469_v35 = vpop.eup %1468 }
 0xc66   :  { %587 = vrot.lane.b32.xlu0 %v1469_v35, %s1494_s14 }
 0xcd8   :  { %v588_v58 = vpop.permute.xlu0 %587 }
 0xcd9   :  { %v590_v59 = vmul.f32 %v588_v58, %v572_v52 }
 0xcdb   :  { %592 = vrot.lane.b32.xlu1 %v590_v59, %s1499_s30 }
 0xd4d   :  { %v593_v60 = vpop.permute.xlu1 %592 }
 0xd4e   :  { %1303 = vmatmul.mubr.msk.f32.vlgmr.msra.gmra.mrb[6].mxu0 %vm45_vm0, %v593_v60 }
 0xd4f   :  { %1406 = vmatpush3.bf16.msra.mxu0 %v1587_v25  ;;  %1324 = vmatprep.mubr.msk.f32.mxu0 %vm1496_vm1, %v1497_v30 }
 0xd50   :  { %1407 = vmatprep.subr.bf16.mxu0 %v1495_v22 }
 0xd53   :  { %1409 = vmatpush3.bf16.msra.mxu0 %v1603_v29 }
 0xd54   :  { %1416 = vmatprep.subr.bf16.mxu0 %v1495_v22 }
 0xe21   :  { %v662_v62 = vpop.f32.mrb[6].mxu0 }
 0xe22   :  { %v666_v63 = vadd.f32 %v662_v62, %v162_v61  ;;  %v1304_v0 = vpop.f32.mrb[7].mxu0  ;;  %v986_v61 = vld [vmem:[%s1779_s6 + $0x20] sm:$0xff]  ;;  %v987_v62 = vld [vmem:[%s1779_s6 + $0x28] sm:$0xff] }
 0xe23   :  { %v1417_v36 = vpack.c.bf16 %v987_v62, %v986_v61 }
 0xe24   :  { %1470 = vtanh.f32 %v666_v63  ;;  %v667_v25 = vmul.f32 0.5, %v666_v63  ;;  %v989_v63 = vld [vmem:[%s1779_s6 + $0x38] sm:$0xff] }
 0xe25   :  { %v1420_v0 = vpack.c.bf16 %v989_v63, %v988_v8 }
 0xe26   :  { %1472 = vtanh.f32 %v667_v25 }
 0xe2e   :  { %v1471_v1 = vpop.eup %1470 }
 0xe2f   :  { %674 = vrot.lane.b32.xlu0 %v1471_v1, %s1494_s14 }
 0xe30   :  { %v1473_v2 = vpop.eup %1472 }
 0xe31   :  { %v669_v3 = vmul.f32 0.5, %v1473_v2 }
 0xe33   :  { %v670_v4 = vadd.f32 0.5, %v669_v3 }
 0xe35   :  { %v672_v29 = vmul.f32 %v670_v4, %v584_v57 }
 0xea1   :  { %v675_v5 = vpop.permute.xlu0 %674 }
 0xea2   :  { %v677_v6 = vmul.f32 %v675_v5, %v670_v4 }
 0xea4   :  { %679 = vrot.lane.b32.xlu1 %v677_v6, %s1499_s30 }
 0xf16   :  { %v680_v7 = vpop.permute.xlu1 %679 }
 0xf17   :  { %v682_v9 = vadd.f32 %v680_v7, %v672_v29 }
 0xf19   :  { %1474 = vtanh.f32 %v682_v9 }
 0xf23   :  { %v1475_v34 = vpop.eup %1474 }
 0xf24   :  { %685 = vrot.lane.b32.xlu0 %v1475_v34, %s1494_s14 }
 0xf96   :  { %v686_v10 = vpop.permute.xlu0 %685 }
 0xf97   :  { %v688_v11 = vmul.f32 %v686_v10, %v670_v4  ;;  %v982_v10 = vld [vmem:[%s1779_s6] sm:$0xff] }
 0xf99   :  { %690 = vrot.lane.b32.xlu1 %v688_v11, %s1499_s30  ;;  %v983_v11 = vld [vmem:[%s1779_s6 + $0x8] sm:$0xff] }
0x100b   :  { %v691_v12 = vpop.permute.xlu1 %690 }
0x100c   :  { %1314 = vmatmul.mubr.msk.f32.vlgmr.msra.gmra.mrb[10].mxu1 %vm45_vm0, %v691_v12  ;;  %v1423_v12 = vpack.c.bf16 %v983_v11, %v982_v10 }
0x100d   :  { %1335 = vmatprep.mubr.msk.f32.mxu1 %vm1496_vm1, %v1497_v30  ;;  %1412 = vmatpush3.bf16.msra.mxu1 %v1411_v31 }
0x100e   :  { %1413 = vmatprep.subr.bf16.mxu1 %v1495_v22 }
0x1011   :  { %1415 = vmatpush3.bf16.msra.mxu1 %v1414_v33 }
0x1014   :  { %1336 = vmatmul.mubr.msk.f32.vlgmr.msra.gmra.mrb[12].mxu1 %vm45_vm0, %v1600_v28 }
0x10df   :  { %v760_v14 = vpop.f32.mrb[10].mxu1 }
0x10e0   :  { %v764_v15 = vadd.f32 %v760_v14, %v167_v13  ;;  %v1315_v16 = vpop.f32.mrb[11].mxu1  ;;  %v985_v13 = vld [vmem:[%s1779_s6 + $0x18] sm:$0xff] }
0x10e2   :  { %1476 = vtanh.f32 %v764_v15  ;;  %v765_v18 = vmul.f32 0.5, %v764_v15 }
0x10e4   :  { %1478 = vtanh.f32 %v765_v18 }
0x10e7   :  { %v962_v42 = vpop.f32.mrb[12].mxu1 }
0x10e8   :  { %v1337_v44 = vpop.f32.mrb[13].mxu1  ;;  %v963_v45 = vadd.f32 %v1164_v43, %v962_v42 }
0x10ea   :  { %v966_v49 = vmul.f32 0.5, %v963_v45 }
0x10ec   :  { %v1477_v17 = vpop.eup %1476 }
0x10ed   :  { %772 = vrot.lane.b32.xlu0 %v1477_v17, %s1494_s14 }
0x10ee   :  { %v1479_v19 = vpop.eup %1478 }
0x10ef   :  { %v767_v20 = vmul.f32 0.5, %v1479_v19 }
0x10f1   :  { %v768_v21 = vadd.f32 0.5, %v767_v20 }
0x10f3   :  { %v770_v38 = vmul.f32 %v768_v21, %v682_v9 }
0x115f   :  { %v773_v23 = vpop.permute.xlu0 %772 }
0x1160   :  { %v775_v24 = vmul.f32 %v773_v23, %v768_v21 }
0x1162   :  { %777 = vrot.lane.b32.xlu1 %v775_v24, %s1499_s30 }
0x11d4   :  { %v778_v39 = vpop.permute.xlu1 %777 }
0x11d5   :  { %v780_v40 = vadd.f32 %v778_v39, %v770_v38 }
0x11d7   :  { %1480 = vtanh.f32 %v780_v40 }
0x11d8   :  { %1482 = vtanh.f32 %v963_v45 }
0x11d9   :  { %1484 = vtanh.f32 %v966_v49 }
0x11e1   :  { %v1481_v41 = vpop.eup %1480 }
0x11e2   :  { %783 = vrot.lane.b32.xlu0 %v1481_v41, %s1494_s14  ;;  %v1483_v28 = vpop.eup %1482 }
0x11e3   :  { %v1485_v50 = vpop.eup %1484 }
0x11e4   :  { %v968_v51 = vmul.f32 0.5, %v1485_v50 }
0x11e6   :  { %v969_v52 = vadd.f32 0.5, %v968_v51 }
0x1254   :  { %v784_v46 = vpop.permute.xlu0 %783 }
0x1255   :  { %v786_v47 = vmul.f32 %v784_v46, %v768_v21 }
0x1257   :  { %788 = vrot.lane.b32.xlu1 %v786_v47, %s1499_s30 }
0x125b   :  { %972 = vrot.lane.b32.xlu1 %v1483_v28, %s1494_s14 }
0x12c9   :  { %v789_v48 = vpop.permute.xlu1 %788 }
0x12ca   :  { %1325 = vmatmul.mubr.msk.f32.vlgmr.msra.gmra.mrb[8].mxu0 %vm45_vm0, %v789_v48 }
0x12cb   :  { %1346 = vmatprep.mubr.msk.f32.mxu0 %vm1496_vm1, %v1497_v30  ;;  %1418 = vmatpush3.bf16.msra.mxu0 %v1417_v36 }
0x12cc   :  { %1419 = vmatprep.subr.bf16.mxu0 %v1495_v22 }
0x12cd   :  { %v973_v53 = vpop.permute.xlu1 %972 }
0x12ce   :  { %v975_v54 = vmul.f32 %v973_v53, %v969_v52 }
0x12cf   :  { %1421 = vmatpush3.bf16.msra.mxu0 %v1420_v0 }
0x12d0   :  { %1486 = vtanh.f32 %v975_v54  ;;  %1422 = vmatprep.subr.bf16.mxu0 %v1495_v22 }
0x12da   :  { %v1487_v55 = vpop.eup %1486 }
0x12db   :  { %978 = vrot.lane.b32.xlu1 %v1487_v55, %s1498_s2 }
0x134d   :  { %v979_v35 = vpop.permute.xlu1 %978 }
0x134e   :  { %v981_v60 = vmul.f32 %v979_v35, %v969_v52 }
0x1350   :  { %991 = vrot.lane.b32.xlu1 %v981_v60, %s1499_s30 }
0x139d   :  { %v858_v57 = vpop.f32.mrb[8].mxu0 }
0x139e   :  { %v862_v58 = vadd.f32 %v858_v57, %v172_v56  ;;  %v1326_v59 = vpop.f32.mrb[9].mxu0 }
0x13a0   :  { %1488 = vtanh.f32 %v862_v58  ;;  %v863_v25 = vmul.f32 0.5, %v862_v58 }
0x13a2   :  { %1490 = vtanh.f32 %v863_v25 }
0x13aa   :  { %v1489_v1 = vpop.eup %1488 }
0x13ab   :  { %870 = vrot.lane.b32.xlu0 %v1489_v1, %s1494_s14 }
0x13ac   :  { %v1491_v3 = vpop.eup %1490 }
0x13ad   :  { %v865_v4 = vmul.f32 0.5, %v1491_v3 }
0x13af   :  { %v866_v5 = vadd.f32 0.5, %v865_v4 }
0x13b1   :  { %v868_v7 = vmul.f32 %v866_v5, %v780_v40 }
0x13c2   :  { %v992_v2 = vpop.permute.xlu1 %991 }
0x13c3   :  { %1347 = vmatmul.mubr.msk.f32.vlgmr.msra.gmra.mrb[10].mxu0 %vm45_vm0, %v992_v2 }
0x13c4   :  { %1357 = vmatprep.mubr.msk.f32.mxu0 %vm1496_vm1, %v1497_v30  ;;  %v984_v30 = vld [vmem:[%s1779_s6 + $0x10] sm:$0xff]  ;;  %1424 = vmatpush3.bf16.msra.mxu0 %v1423_v12 }
0x13c5   :  { %v1426_v14 = vpack.c.bf16 %v985_v13, %v984_v30  ;;  %1425 = vmatprep.subr.bf16.mxu0 %v1495_v22 }
0x13c8   :  { %1427 = vmatpush3.bf16.msra.mxu0 %v1426_v14 }
0x141d   :  { %v871_v6 = vpop.permute.xlu0 %870 }
0x141e   :  { %v873_v29 = vmul.f32 %v871_v6, %v866_v5 }
0x1420   :  { %875 = vrot.lane.b32.xlu0 %v873_v29, %s1499_s30 }
0x1492   :  { %v876_v9 = vpop.permute.xlu0 %875 }
0x1493   :  { %v878_v34 = vadd.f32 %v876_v9, %v868_v7 }
0x1495   :  { %1492 = vtanh.f32 %v878_v34 }
0x149f   :  { %v1493_v15 = vpop.eup %1492 }
0x14a0   :  { %881 = vrot.lane.b32.xlu0 %v1493_v15, %s1494_s14 }
0x1512   :  { %v882_v16 = vpop.permute.xlu0 %881 }
0x1513   :  { %v884_v17 = vmul.f32 %v882_v16, %v866_v5 }
0x1515   :  { %1066 = vrot.lane.b32.xlu0 %v884_v17, %s1499_s30 }
0x1587   :  { %v1067_v18 = vpop.permute.xlu0 %1066 }
0x1588   :  { %1358 = vmatmul.mubr.msk.f32.vlgmr.msra.gmra.mrb[10].mxu0 %vm45_vm0, %v1067_v18 }
0x165b   :  { %v1136_v19 = vpop.f32.mrb[10].mxu0 }
0x165c   :  { %vm1140_vm2 = vcmp.ge.f32.partialorder %v1136_v19, 0.0  ;;  %v1141_v20 = vmul.f32 0.01, %v1136_v19  ;;  %v1359_v21 = vpop.f32.mrb[11].mxu0 }
0x165e   :  { %v1142_v23 = vsel %vm1140_vm2, %v1136_v19, %v1141_v20 }
0x165f   :  { %1143 = vst [vmem:[%s1780_s7] sm:$0xff] %v1142_v23 }

</bundles_post_ra>
